<compile_context>
chip_gen: v5e
topology: v5e:2x2
jax: 0.10.0
libtpu: 0.0.40
codegen_flags: <defaults>
</compile_context>

<pallas_src>
import functools
import math

import jax
import jax.numpy as jnp
from jax import lax
from jax.experimental import pallas as pl
from jax.experimental.pallas import tpu as pltpu


def _cross_attn_kernel(tok_ref, w_ref, b_ref, oi_ref, ot_ref, *, hid_dim):
    BB, T, C = tok_ref.shape
    N = oi_ref.shape[1]
    L = ot_ref.shape[1]
    h2 = 2 * hid_dim

    tok = tok_ref[...]                     # (BB, T=N+L, C) stacked tokens
    xi = tok[:, :N, :]                     # (BB, N, C) image tokens (also i_v)
    xt = tok[:, N:, :]                     # (BB, L, C) text tokens  (also t_v)

    # Single fused projection matmul for both modalities and all BB batch
    # elements.  Output columns: [img_q*sqrt(hid) | img_k | text_k | text_q*sqrt(hid)].
    proj = (jnp.dot(tok.reshape(BB * T, C), w_ref[...],
                    preferred_element_type=jnp.float32)
            + b_ref[...]).reshape(BB, T, 4 * hid_dim)

    # Image rows keep the image half, text rows keep the text half; both lane
    # slices start at 0 or 2*hid=128 -> lane-tile aligned (no repack).
    pi = proj[:, :N, :h2]                  # (BB, N, 2*hid): [i_q | i_k]
    pt = proj[:, N:, h2:]                  # (BB, L, 2*hid): [t_k | t_q]

    # Contract the full 128-lane projections for the scores; zero the unwanted
    # half of ONE operand with a lane mask instead of lane-offset-64 slices.
    lane_i = lax.broadcasted_iota(jnp.int32, pi.shape, 2)
    lane_t = lax.broadcasted_iota(jnp.int32, pt.shape, 2)
    pi_q = jnp.where(lane_i < hid_dim, pi, 0.0)    # keep i_q, zero i_k
    pt_q = jnp.where(lane_t >= hid_dim, pt, 0.0)   # keep t_q, zero t_k

    # MXU operand dtype follows the caller dtype; accumulation stays f32.
    mm_dt = tok.dtype

    # ---- image queries attend over text ---------------------------------
    s_i = jnp.einsum('bnh,blh->bnl', pi_q.astype(mm_dt), pt.astype(mm_dt),
                     preferred_element_type=jnp.float32)          # (BB, N, L)
    s_i = s_i - jnp.max(s_i, axis=-1, keepdims=True)
    p_i = jnp.exp(s_i)
    p_i = p_i * pl.reciprocal(jnp.sum(p_i, axis=-1, keepdims=True), approx=True)
    oi_ref[...] = jnp.einsum('bnl,blc->bnc', p_i.astype(mm_dt), xt,
                             preferred_element_type=jnp.float32
                             ).astype(oi_ref.dtype)               # (BB, N, C)

    # ---- text queries attend over image ----------------------------------
    s_t = jnp.einsum('blh,bnh->bln', pt_q.astype(mm_dt), pi.astype(mm_dt),
                     preferred_element_type=jnp.float32)          # (BB, L, N)
    s_t = s_t - jnp.max(s_t, axis=-1, keepdims=True)
    p_t = jnp.exp(s_t)
    p_t = p_t * pl.reciprocal(jnp.sum(p_t, axis=-1, keepdims=True), approx=True)
    ot_ref[...] = jnp.einsum('bln,bnc->blc', p_t.astype(mm_dt), xi,
                             preferred_element_type=jnp.float32
                             ).astype(ot_ref.dtype)               # (BB, L, C)


def cross_attention_pallas(xi_flat, xt_flat, params, hid_dim, num_steps=None):
    """xi_flat: (B, N, C) image tokens, xt_flat: (B, L, C) text tokens."""
    B, N, C = xi_flat.shape
    _, L, _ = xt_flat.shape
    wq, bq, wk, bk, wtk, btk, wtq, btq = params
    dt = xi_flat.dtype

    # Fold the softmax scale (PyTorch: iscores / scale, scale = hid**-0.5,
    # i.e. multiply logits by sqrt(hid)) into the query-side weights/biases,
    # and fuse ALL four projections into one lane-dense (C, 4*hid) matrix.
    inv_scale = math.sqrt(hid_dim)
    w_all = jnp.concatenate(
        [wq * inv_scale, wk, wtk, wtq * inv_scale], axis=1).astype(dt)   # (C, 4*hid)
    b_all = jnp.concatenate(
        [bq * inv_scale, bk, btk, btq * inv_scale], axis=1).astype(jnp.float32)

    # Stack image and text tokens row-wise: one lane-dense input slab.
    tok = jnp.concatenate([xi_flat, xt_flat], axis=1)                    # (B, N+L, C)
    T = N + L
    h4 = 4 * hid_dim

    if num_steps is None:
        # Single grid step: v5e/v6e have one TensorCore, so extra steps are a
        # serial loop with fixed per-step overhead and duplicate weight blocks.
        # TODO(synk): on v7x pass num_steps=2 only after verifying (xprof /
        # bundle dump) that the "parallel" axis shards across both TCs.
        num_steps = 1
    assert B % num_steps == 0
    BB = B // num_steps

    kernel = functools.partial(_cross_attn_kernel, hid_dim=hid_dim)

    out_i, out_t = pl.pallas_call(
        kernel,
        out_shape=(jax.ShapeDtypeStruct((B, N, C), dt),
                   jax.ShapeDtypeStruct((B, L, C), dt)),
        grid_spec=pltpu.PrefetchScalarGridSpec(
            num_scalar_prefetch=0,
            grid=(num_steps,),
            in_specs=[
                pl.BlockSpec((BB, T, C), lambda b: (b, 0, 0)),   # stacked tokens
                pl.BlockSpec((C, h4), lambda b: (0, 0)),         # fused weights
                pl.BlockSpec((1, h4), lambda b: (0, 0)),         # fused biases
            ],
            out_specs=[
                pl.BlockSpec((BB, N, C), lambda b: (b, 0, 0)),
                pl.BlockSpec((BB, L, C), lambda b: (b, 0, 0)),
            ],
        ),
        compiler_params=pltpu.CompilerParams(
            dimension_semantics=("parallel",)),
    )(tok, w_all, b_all)
    return out_i, out_t


def fold_conv_bn(conv_w, gamma, beta, mean, var, eps=1e-5):
    """1x1 conv (out, in) + BatchNorm2d (eval) -> effective (in, out) weight, (1, out) bias."""
    inv_std = gamma / jnp.sqrt(var + eps)                 # (out,)
    w_eff = (conv_w * inv_std[:, None]).T                 # (in, out)
    b_eff = (beta - mean * inv_std)[None, :]              # (1, out)
    return w_eff, b_eff


def reference(xi_flat, xt_flat, params, hid_dim):
    wq, bq, wk, bk, wtk, btk, wtq, btq = params
    inv_scale = math.sqrt(hid_dim)
    i_q = xi_flat @ wq + bq
    t_k = xt_flat @ wtk + btk
    attn_i = jax.nn.softmax((i_q @ jnp.swapaxes(t_k, 1, 2)) * inv_scale, axis=-1)
    out_i = attn_i @ xt_flat
    t_q = xt_flat @ wtq + btq
    i_k = xi_flat @ wk + bk
    attn_t = jax.nn.softmax((t_q @ jnp.swapaxes(i_k, 1, 2)) * inv_scale, axis=-1)
    out_t = attn_t @ xi_flat
    return out_i, out_t


if __name__ == "__main__":
    # Module defaults: dim=128, hid_dim=64.  Small spatial / text length.
    B, dim, hid_dim = 2, 128, 64
    H = W = 8                 # image spatial -> N = 64 image tokens
    L = 8                     # text length (input_t given as (B, dim, L))

    key = jax.random.PRNGKey(0)
    keys = jax.random.split(key, 16)

    # Inputs (PyTorch layouts).
    input_i = jax.random.normal(keys[0], (B, dim, H, W), dtype=jnp.float32)   # NCHW
    input_t = jax.random.normal(keys[1], (B, dim, L), dtype=jnp.float32)      # (B, C, L)

    # Parameters (deterministic, synthetic).
    def rnd(k, shape, s=0.05):
        return s * jax.random.normal(k, shape, dtype=jnp.float32)

    # img_q / img_k: Conv2d(dim, hid, 1, bias=False) + BatchNorm2d(hid) (eval mode).
    convq_w = rnd(keys[2], (hid_dim, dim))
    convk_w = rnd(keys[3], (hid_dim, dim))
    bnq_gamma = 1.0 + rnd(keys[4], (hid_dim,))
    bnq_beta = rnd(keys[5], (hid_dim,))
    bnq_mean = rnd(keys[6], (hid_dim,))
    bnq_var = jnp.abs(1.0 + rnd(keys[7], (hid_dim,)))
    bnk_gamma = 1.0 + rnd(keys[8], (hid_dim,))
    bnk_beta = rnd(keys[9], (hid_dim,))
    bnk_mean = rnd(keys[10], (hid_dim,))
    bnk_var = jnp.abs(1.0 + rnd(keys[11], (hid_dim,)))

    wq_eff, bq_eff = fold_conv_bn(convq_w, bnq_gamma, bnq_beta, bnq_mean, bnq_var)
    wk_eff, bk_eff = fold_conv_bn(convk_w, bnk_gamma, bnk_beta, bnk_mean, bnk_var)

    # text_k / text_q: nn.Linear(dim, hid)  (y = x W^T + b) -> store W^T (dim, hid).
    wtk = rnd(keys[12], (dim, hid_dim))
    btk = rnd(keys[13], (hid_dim,))[None, :]
    wtq = rnd(keys[14], (dim, hid_dim))
    btq = rnd(keys[15], (hid_dim,))[None, :]

    params = (wq_eff, bq_eff, wk_eff, bk_eff, wtk, btk, wtq, btq)

    # Glue: PyTorch view/permute -> token layouts.
    xi_flat = jnp.transpose(input_i.reshape(B, dim, H * W), (0, 2, 1))  # (B, N, C)
    xt_flat = jnp.transpose(input_t, (0, 2, 1))                         # (B, L, C)

    out_i, out_t = cross_attention_pallas(xi_flat, xt_flat, params, hid_dim)
    jax.block_until_ready((out_i, out_t))

    ref_i, ref_t = reference(xi_flat, xt_flat, params, hid_dim)
    assert out_i.shape == (B, H * W, dim) and out_t.shape == (B, L, dim)
    # Tolerance covers the EUP approximate-reciprocal softmax normalization.
    assert jnp.allclose(out_i, ref_i, atol=5e-3, rtol=5e-3)
    assert jnp.allclose(out_t, ref_t, atol=5e-3, rtol=5e-3)

    print("KERNEL_OK")
</pallas_src>

<mosaic_0001>
module attributes {stable_mosaic.version = 11 : i64} {
  func.func @_cross_attn_kernel(%arg0: i32, %arg1: memref<2x72x128xf32, #tpu.memory_space<vmem>>, %arg2: memref<128x256xf32, #tpu.memory_space<vmem>>, %arg3: memref<1x256xf32, #tpu.memory_space<vmem>>, %arg4: memref<2x64x128xf32, #tpu.memory_space<vmem>>, %arg5: memref<2x8x128xf32, #tpu.memory_space<vmem>>) attributes {dimension_semantics = [#tpu.dimension_semantics<parallel>], iteration_bounds = array<i64: 1>, scalar_prefetch = 0 : i64, scratch_operands = 0 : i64, tpu.core_type = #tpu.core_type<tc>, window_params = [{transform_indices = @transform_0, window_bounds = array<i64: 2, 72, 128>}, {pipeline_mode = #tpu.pipeline_mode<synchronous>, transform_indices = @transform_1, window_bounds = array<i64: 128, 256>}, {pipeline_mode = #tpu.pipeline_mode<synchronous>, transform_indices = @transform_2, window_bounds = array<i64: 1, 256>}, {transform_indices = @transform_3, window_bounds = array<i64: 2, 64, 128>}, {transform_indices = @transform_4, window_bounds = array<i64: 2, 8, 128>}]} {
    %c0 = arith.constant 0 : index
    %c0_0 = arith.constant 0 : index
    %c0_1 = arith.constant 0 : index
    %0 = vector.load %arg1[%c0, %c0_0, %c0_1] : memref<2x72x128xf32, #tpu.memory_space<vmem>>, vector<2x72x128xf32>
    %1 = vector.extract_strided_slice %0 {offsets = [0, 0, 0], sizes = [2, 64, 128], strides = [1, 1, 1]} : vector<2x72x128xf32> to vector<2x64x128xf32>
    %2 = vector.extract_strided_slice %0 {offsets = [0, 64, 0], sizes = [2, 8, 128], strides = [1, 1, 1]} : vector<2x72x128xf32> to vector<2x8x128xf32>
    %3 = vector.shape_cast %0 : vector<2x72x128xf32> to vector<144x128xf32>
    %c0_2 = arith.constant 0 : index
    %c0_3 = arith.constant 0 : index
    %4 = vector.load %arg2[%c0_2, %c0_3] : memref<128x256xf32, #tpu.memory_space<vmem>>, vector<128x256xf32>
    %cst = arith.constant dense<0.000000e+00> : vector<144x256xf32>
    %5 = tpu.matmul %3, %4, %cst {dimension_numbers = #tpu.dot_dimension_numbers<[1], [0], [0], [1], [0, 0, 1, 1], [], []>} : vector<144x128xf32>, vector<128x256xf32>, vector<144x256xf32> -> vector<144x256xf32>
    %c0_4 = arith.constant 0 : index
    %c0_5 = arith.constant 0 : index
    %6 = vector.load %arg3[%c0_4, %c0_5] : memref<1x256xf32, #tpu.memory_space<vmem>>, vector<1x256xf32>
    %7 = vector.broadcast %6 : vector<1x256xf32> to vector<144x256xf32>
    %8 = arith.addf %5, %7 : vector<144x256xf32>
    %9 = vector.shape_cast %8 : vector<144x256xf32> to vector<2x72x256xf32>
    %10 = vector.extract_strided_slice %9 {offsets = [0, 0, 0], sizes = [2, 64, 128], strides = [1, 1, 1]} : vector<2x72x256xf32> to vector<2x64x128xf32>
    %11 = vector.extract_strided_slice %9 {offsets = [0, 64, 128], sizes = [2, 8, 128], strides = [1, 1, 1]} : vector<2x72x256xf32> to vector<2x8x128xf32>
    %12 = tpu.iota {dimensions = array<i32: 2>} : vector<2x64x128xi32>
    %13 = tpu.iota {dimensions = array<i32: 2>} : vector<2x8x128xi32>
    %c64_i32 = arith.constant 64 : i32
    %14 = vector.broadcast %c64_i32 : i32 to vector<2x64x128xi32>
    %15 = arith.cmpi slt, %12, %14 : vector<2x64x128xi32>
    %cst_6 = arith.constant 0.000000e+00 : f32
    %16 = vector.broadcast %cst_6 : f32 to vector<2x64x128xf32>
    %17 = arith.select %15, %10, %16 : vector<2x64x128xi1>, vector<2x64x128xf32>
    %c64_i32_7 = arith.constant 64 : i32
    %18 = vector.broadcast %c64_i32_7 : i32 to vector<2x8x128xi32>
    %19 = arith.cmpi sge, %13, %18 : vector<2x8x128xi32>
    %cst_8 = arith.constant 0.000000e+00 : f32
    %20 = vector.broadcast %cst_8 : f32 to vector<2x8x128xf32>
    %21 = arith.select %19, %11, %20 : vector<2x8x128xi1>, vector<2x8x128xf32>
    "tpu.trace_start"() <{level = 10 : i32, message = "bnh,blh->bnl"}> : () -> ()
    %cst_9 = arith.constant dense<0.000000e+00> : vector<2x64x8xf32>
    %22 = tpu.matmul %17, %11, %cst_9 {dimension_numbers = #tpu.dot_dimension_numbers<[2], [2], [1], [1], [0, 0, 0, 1, 1, 1], [0], [0]>} : vector<2x64x128xf32>, vector<2x8x128xf32>, vector<2x64x8xf32> -> vector<2x64x8xf32>
    "tpu.trace_stop"() : () -> ()
    %cst_10 = arith.constant dense<0xFF800000> : vector<2x64xf32>
    %23 = vector.multi_reduction <maximumf>, %22, %cst_10 [2] : vector<2x64x8xf32> to vector<2x64xf32>
    %24 = vector.shape_cast %23 : vector<2x64xf32> to vector<2x64x1xf32>
    %25 = vector.broadcast %24 : vector<2x64x1xf32> to vector<2x64x8xf32>
    %26 = arith.subf %22, %25 : vector<2x64x8xf32>
    %27 = math.exp %26 : vector<2x64x8xf32>
    %cst_11 = arith.constant dense<0.000000e+00> : vector<2x64xf32>
    %28 = vector.multi_reduction <add>, %27, %cst_11 [2] : vector<2x64x8xf32> to vector<2x64xf32>
    %29 = vector.shape_cast %28 : vector<2x64xf32> to vector<2x64x1xf32>
    %30 = tpu.reciprocal %29 {approx = true} : vector<2x64x1xf32> -> vector<2x64x1xf32>
    %31 = vector.broadcast %30 : vector<2x64x1xf32> to vector<2x64x8xf32>
    %32 = arith.mulf %27, %31 : vector<2x64x8xf32>
    "tpu.trace_start"() <{level = 10 : i32, message = "bnl,blc->bnc"}> : () -> ()
    %cst_12 = arith.constant dense<0.000000e+00> : vector<2x64x128xf32>
    %33 = tpu.matmul %32, %2, %cst_12 {dimension_numbers = #tpu.dot_dimension_numbers<[2], [1], [1], [2], [0, 0, 0, 1, 1, 2], [0], [0]>} : vector<2x64x8xf32>, vector<2x8x128xf32>, vector<2x64x128xf32> -> vector<2x64x128xf32>
    "tpu.trace_stop"() : () -> ()
    %c0_13 = arith.constant 0 : index
    %c0_14 = arith.constant 0 : index
    %c0_15 = arith.constant 0 : index
    %34 = vector.load %arg4[%c0_13, %c0_14, %c0_15] : memref<2x64x128xf32, #tpu.memory_space<vmem>>, vector<2x64x128xf32>
    tpu.vector_store %arg4[%c0_13, %c0_14, %c0_15], %33 {strides = array<i32>} : memref<2x64x128xf32, #tpu.memory_space<vmem>>, vector<2x64x128xf32>,
    "tpu.trace_start"() <{level = 10 : i32, message = "blh,bnh->bln"}> : () -> ()
    %cst_16 = arith.constant dense<0.000000e+00> : vector<2x8x64xf32>
    %35 = tpu.matmul %21, %10, %cst_16 {dimension_numbers = #tpu.dot_dimension_numbers<[2], [2], [1], [1], [0, 0, 0, 1, 1, 1], [0], [0]>} : vector<2x8x128xf32>, vector<2x64x128xf32>, vector<2x8x64xf32> -> vector<2x8x64xf32>
    "tpu.trace_stop"() : () -> ()
    %cst_17 = arith.constant dense<0xFF800000> : vector<2x8xf32>
    %36 = vector.multi_reduction <maximumf>, %35, %cst_17 [2] : vector<2x8x64xf32> to vector<2x8xf32>
    %37 = vector.shape_cast %36 : vector<2x8xf32> to vector<2x8x1xf32>
    %38 = vector.broadcast %37 : vector<2x8x1xf32> to vector<2x8x64xf32>
    %39 = arith.subf %35, %38 : vector<2x8x64xf32>
    %40 = math.exp %39 : vector<2x8x64xf32>
    %cst_18 = arith.constant dense<0.000000e+00> : vector<2x8xf32>
    %41 = vector.multi_reduction <add>, %40, %cst_18 [2] : vector<2x8x64xf32> to vector<2x8xf32>
    %42 = vector.shape_cast %41 : vector<2x8xf32> to vector<2x8x1xf32>
    %43 = tpu.reciprocal %42 {approx = true} : vector<2x8x1xf32> -> vector<2x8x1xf32>
    %44 = vector.broadcast %43 : vector<2x8x1xf32> to vector<2x8x64xf32>
    %45 = arith.mulf %40, %44 : vector<2x8x64xf32>
    "tpu.trace_start"() <{level = 10 : i32, message = "bln,bnc->blc"}> : () -> ()
    %cst_19 = arith.constant dense<0.000000e+00> : vector<2x8x128xf32>
    %46 = tpu.matmul %45, %1, %cst_19 {dimension_numbers = #tpu.dot_dimension_numbers<[2], [1], [1], [2], [0, 0, 0, 1, 1, 2], [0], [0]>} : vector<2x8x64xf32>, vector<2x64x128xf32>, vector<2x8x128xf32> -> vector<2x8x128xf32>
    "tpu.trace_stop"() : () -> ()
    %c0_20 = arith.constant 0 : index
    %c0_21 = arith.constant 0 : index
    %c0_22 = arith.constant 0 : index
    %47 = vector.load %arg5[%c0_20, %c0_21, %c0_22] : memref<2x8x128xf32, #tpu.memory_space<vmem>>, vector<2x8x128xf32>
    tpu.vector_store %arg5[%c0_20, %c0_21, %c0_22], %46 {strides = array<i32>} : memref<2x8x128xf32, #tpu.memory_space<vmem>>, vector<2x8x128xf32>,
    return
  }
  func.func @transform_0(%arg0: i32) -> (i32, i32, i32) {
    %c0_i32 = arith.constant 0 : i32
    %c0_i32_0 = arith.constant 0 : i32
    %c0_i32_1 = arith.constant 0 : i32
    return %arg0, %c0_i32, %c0_i32_0 : i32, i32, i32
  }
  func.func @transform_1(%arg0: i32) -> (i32, i32) {
    %c0_i32 = arith.constant 0 : i32
    %c0_i32_0 = arith.constant 0 : i32
    %c0_i32_1 = arith.constant 0 : i32
    return %c0_i32, %c0_i32_0 : i32, i32
  }
  func.func @transform_2(%arg0: i32) -> (i32, i32) {
    %c0_i32 = arith.constant 0 : i32
    %c0_i32_0 = arith.constant 0 : i32
    %c0_i32_1 = arith.constant 0 : i32
    return %c0_i32, %c0_i32_0 : i32, i32
  }
  func.func @transform_3(%arg0: i32) -> (i32, i32, i32) {
    %c0_i32 = arith.constant 0 : i32
    %c0_i32_0 = arith.constant 0 : i32
    %c0_i32_1 = arith.constant 0 : i32
    return %arg0, %c0_i32, %c0_i32_0 : i32, i32, i32
  }
  func.func @transform_4(%arg0: i32) -> (i32, i32, i32) {
    %c0_i32 = arith.constant 0 : i32
    %c0_i32_0 = arith.constant 0 : i32
    %c0_i32_1 = arith.constant 0 : i32
    return %arg0, %c0_i32, %c0_i32_0 : i32, i32, i32
  }
}

</mosaic_0001>

<bundles_post_ra>
// kernel: tpu_custom_call.1
= control target key start
LH: loop header
LB: loop body
LE: loop exit
PB: predicated region body
PF: predicated region fallthrough
CT: control target
= control target key end

     0   :  { %10 = vsyncpa [#allocation3], 0  ;;  %s1435_s0 = inlined_call_operand.hbm [shape: f32[2,72,128], index: 0, kind: input, shape index: {}]   ;;  %s1436_s1 = inlined_call_operand.hbm [shape: f32[128,256], index: 1, kind: input, shape index: {}]   ;;  %s1437_s2 = inlined_call_operand.hbm [shape: f32[1,256], index: 2, kind: input, shape index: {}]   ;;  %s1438_s3 = inlined_call_operand.hbm [shape: f32[2,64,128], index: 3, kind: output, shape index: {0}]   ;;  %s1439_s4 = inlined_call_operand.hbm [shape: f32[2,8,128], index: 4, kind: output, shape index: {1}]  }
   0x1   :  { %11 = vsyncpa [#allocation6], 0 }
   0x2   :  { %12 = vsyncpa [#allocation4], 0  ;;  %s31_s17 = sshll.u32 %s1436_s1, 4  ;;  %s32_s17 = int_to_ptr.hbm [resolvable:$true] %s31_s17 }
   0x3   :  { %13 = vsyncpa [#allocation10], 0  ;;  %s1064_s18 = smov [#allocation5]   ;;  %s18_s22 = sshll.u32 %s1435_s0, 4  ;;  %s19_s22 = int_to_ptr.hbm [resolvable:$true] %s18_s22 }
   0x4   :  { %s33_s19 = sshll.u32 %s1064_s18, 4  ;;  %s1065_s23 = smov 256   ;;  %s34_s19 = int_to_ptr.vmem [resolvable:$true] %s33_s19 }
   0x5   :  { %s1066_s24 = smov 16   ;;  %s1067_s25 = smov [#allocation2]  }
   0x6   :  { %39 = dma.hbm_to_vmem [thread:$0]  %s32_s17, 4096, %s34_s19, [#allocation6], %s1065_s23, %s1065_s23, %s1066_s24  }
   0x7   :  { %s20_s26 = sshll.u32 %s1067_s25, 4  ;;  %s1068_s27 = smov 128   ;;  %s21_s26 = int_to_ptr.vmem [resolvable:$true] %s20_s26 }
   0x8   :  { %s1069_s28 = smov 8   ;;  %s45_s30 = sshll.u32 %s1437_s2, 4  ;;  %s46_s30 = int_to_ptr.hbm [resolvable:$true] %s45_s30 }
   0x9   :  { %26 = dma.hbm_to_vmem [thread:$0]  %s19_s22, 2304, %s21_s26, [#allocation3], %s1068_s27, %s1068_s27, %s1069_s28  }
   0xa   :  { %s1070_s5 = smov [#allocation7]  }
   0xb   :  { %s47_s0 = sshll.u32 %s1070_s5, 4  ;;  %s48_s0 = int_to_ptr.vmem [resolvable:$true] %s47_s0 }
   0xc   :  { %50 = dma.hbm_to_vmem [thread:$0]  %s46_s30, 32, %s48_s0, [#allocation6]  }
   0xd   :  { %1056 = dma.done.wait [#allocation3], 2304  }
   0xe   :  { %1057 = vsyncadd [#allocation3], 4294964992 }
   0xf   :  { %1058 = dma.done.wait [#allocation6], 4128  }
  0x10   :  { %1059 = vsyncadd [#allocation6], 4294963168  ;;  %v112_v0 = vld [vmem:[#allocation5 + $0xf8] sm:$0xff]  ;;  %v110_v1 = vld [vmem:[#allocation5 + $0xe8] sm:$0xff]  ;;  %vm347_vm1 = vcmask 64512   ;;  %vm710_vm3 = vcmask 523264  }
  0x11   :  { %188 = vmatpush.msra.mxu1 %v112_v0  ;;  %v108_v2 = vld [vmem:[#allocation5 + $0xd8] sm:$0xff]  ;;  %v111_v3 = vld [vmem:[#allocation5 + $0xf0] sm:$0xff]  ;;  %v109_v4 = vld [vmem:[#allocation5 + $0xe0] sm:$0xff]  ;;  %s1071_s2 = smov [#allocation8]   ;;  %s787_s9 = sshll.u32 %s1438_s3, 4  ;;  %s788_s9 = int_to_ptr.hbm [resolvable:$true] %s787_s9 }
  0x12   :  { %119 = vmatpush.msra.mxu0 %v111_v3  ;;  %v106_v5 = vld [vmem:[#allocation5 + $0xc8] sm:$0xff]  ;;  %v107_v6 = vld [vmem:[#allocation5 + $0xd0] sm:$0xff]  ;;  %v104_v7 = vld [vmem:[#allocation5 + $0xb8] sm:$0xff]  ;;  %v243_v3 = vlaneseq  ;;  %s785_s6 = sshll.u32 %s1071_s2, 4  ;;  %s1072_s10 = smov [#allocation9]   ;;  %s786_s6 = int_to_ptr.vmem [resolvable:$true] %s785_s6 }
  0x13   :  { %189 = vmatpush.msra.mxu1 %v110_v1  ;;  %v105_v8 = vld [vmem:[#allocation5 + $0xc0] sm:$0xff]  ;;  %v102_v9 = vld [vmem:[#allocation5 + $0xa8] sm:$0xff]  ;;  %v103_v10 = vld [vmem:[#allocation5 + $0xb0] sm:$0xff]  ;;  %s798_s11 = sshll.u32 %s1072_s10, 4  ;;  %s800_s14 = sshll.u32 %s1439_s4, 4  ;;  %s799_s11 = int_to_ptr.vmem [resolvable:$true] %s798_s11  ;;  %s801_s14 = int_to_ptr.hbm [resolvable:$true] %s800_s14 }
  0x14   :  { %120 = vmatpush.msra.mxu0 %v109_v4  ;;  %v100_v11 = vld [vmem:[#allocation5 + $0x98] sm:$0xff]  ;;  %v101_v12 = vld [vmem:[#allocation5 + $0xa0] sm:$0xff]  ;;  %v98_v13 = vld [vmem:[#allocation5 + $0x88] sm:$0xff] }
  0x15   :  { %190 = vmatpush.msra.mxu1 %v108_v2  ;;  %v99_v14 = vld [vmem:[#allocation5 + $0x90] sm:$0xff]  ;;  %v96_v15 = vld [vmem:[#allocation5 + $0x78] sm:$0xff]  ;;  %v97_v16 = vld [vmem:[#allocation5 + $0x80] sm:$0xff] }
  0x16   :  { %121 = vmatpush.msra.mxu0 %v107_v6  ;;  %v94_v17 = vld [vmem:[#allocation5 + $0x68] sm:$0xff]  ;;  %v95_v18 = vld [vmem:[#allocation5 + $0x70] sm:$0xff]  ;;  %v92_v19 = vld [vmem:[#allocation5 + $0x58] sm:$0xff]  ;;  %v1180_v6 = vand.u32 127, %v243_v3 }
  0x17   :  { %191 = vmatpush.msra.mxu1 %v106_v5  ;;  %v93_v20 = vld [vmem:[#allocation5 + $0x60] sm:$0xff]  ;;  %v90_v21 = vld [vmem:[#allocation5 + $0x48] sm:$0xff]  ;;  %v91_v22 = vld [vmem:[#allocation5 + $0x50] sm:$0xff] }
  0x18   :  { %122 = vmatpush.msra.mxu0 %v105_v8  ;;  %v88_v23 = vld [vmem:[#allocation5 + $0x38] sm:$0xff]  ;;  %v89_v24 = vld [vmem:[#allocation5 + $0x40] sm:$0xff]  ;;  %v86_v25 = vld [vmem:[#allocation5 + $0x28] sm:$0xff]  ;;  %vm245_vm0 = vcmp.lt.s32.totalorder %v1180_v6, 64  ;;  %vm262_vm2 = vcmp.ge.s32.totalorder %v1180_v6, 64 }
  0x19   :  { %192 = vmatpush.msra.mxu1 %v104_v7  ;;  %v87_v26 = vld [vmem:[#allocation5 + $0x30] sm:$0xff]  ;;  %v84_v27 = vld [vmem:[#allocation5 + $0x18] sm:$0xff]  ;;  %v85_v28 = vld [vmem:[#allocation5 + $0x20] sm:$0xff] }
  0x1a   :  { %123 = vmatpush.msra.mxu0 %v103_v10  ;;  %v82_v29 = vld [vmem:[#allocation5 + $0x8] sm:$0xff]  ;;  %v83_v30 = vld [vmem:[#allocation5 + $0x10] sm:$0xff]  ;;  %v81_v32 = vld [vmem:[#allocation5] sm:$0xff] }
  0x1b   :  { %193 = vmatpush.msra.mxu1 %v102_v9  ;;  %v1110_v31 = vld [vmem:[#allocation2] sm:$0xff]  ;;  %v1114_v33 = vld [vmem:[#allocation2 + $0x8] sm:$0xff]  ;;  %v1118_v34 = vld [vmem:[#allocation2 + $0x10] sm:$0xff] }
  0x1c   :  { %124 = vmatpush.msra.mxu0 %v101_v12  ;;  %v1122_v35 = vld [vmem:[#allocation2 + $0x18] sm:$0xff]  ;;  %v1126_v36 = vld [vmem:[#allocation2 + $0x20] sm:$0xff]  ;;  %v1130_v37 = vld [vmem:[#allocation2 + $0x28] sm:$0xff] }
  0x1d   :  { %194 = vmatpush.msra.mxu1 %v100_v11  ;;  %v1134_v38 = vld [vmem:[#allocation2 + $0x30] sm:$0xff]  ;;  %v1138_v39 = vld [vmem:[#allocation2 + $0x38] sm:$0xff]  ;;  %v71_v40 = vld [vmem:[#allocation2 + $0x40] sm:$0xff] }
  0x1e   :  { %125 = vmatpush.msra.mxu0 %v99_v14  ;;  %v1142_v41 = vld [vmem:[#allocation2 + $0x48] sm:$0xff]  ;;  %v1146_v42 = vld [vmem:[#allocation2 + $0x50] sm:$0xff]  ;;  %v1150_v43 = vld [vmem:[#allocation2 + $0x58] sm:$0xff] }
  0x1f   :  { %195 = vmatpush.msra.mxu1 %v98_v13  ;;  %v1154_v44 = vld [vmem:[#allocation2 + $0x60] sm:$0xff]  ;;  %v1158_v45 = vld [vmem:[#allocation2 + $0x68] sm:$0xff]  ;;  %v1162_v46 = vld [vmem:[#allocation2 + $0x70] sm:$0xff] }
  0x20   :  { %126 = vmatpush.msra.mxu0 %v97_v16  ;;  %v1166_v47 = vld [vmem:[#allocation2 + $0x78] sm:$0xff]  ;;  %v1170_v49 = vld [vmem:[#allocation2 + $0x80] sm:$0xff]  ;;  %v1174_v52 = vld [vmem:[#allocation2 + $0x88] sm:$0xff] }
  0x21   :  { %196 = vmatpush.msra.mxu1 %v96_v15  ;;  %v113_v1 = vld [vmem:[#allocation7] sm:$0x3] }
  0x22   :  { %127 = vmatpush.msra.mxu0 %v95_v18  ;;  %v116_v4 = vperm.slane %v113_v1, 1  ;;  %v1178_v5 = vperm.slane %v113_v1, 0 }
  0x23   :  { %197 = vmatpush.msra.mxu1 %v94_v17 }
  0x24   :  { %128 = vmatpush.msra.mxu0 %v93_v20 }
  0x25   :  { %198 = vmatpush.msra.mxu1 %v92_v19 }
  0x26   :  { %129 = vmatpush.msra.mxu0 %v91_v22 }
  0x27   :  { %199 = vmatpush.msra.mxu1 %v90_v21 }
  0x28   :  { %130 = vmatpush.msra.mxu0 %v89_v24 }
  0x29   :  { %200 = vmatpush.msra.mxu1 %v88_v23 }
  0x2a   :  { %131 = vmatpush.msra.mxu0 %v87_v26 }
  0x2b   :  { %201 = vmatpush.msra.mxu1 %v86_v25 }
  0x2c   :  { %132 = vmatpush.msra.mxu0 %v85_v28 }
  0x2d   :  { %202 = vmatpush.msra.mxu1 %v84_v27 }
  0x2e   :  { %133 = vmatpush.msra.mxu0 %v83_v30 }
  0x2f   :  { %203 = vmatpush.msra.mxu1 %v82_v29 }
  0x30   :  { %204 = vmatmul.f32.vlgmr.msra.gmra.mxu1 %v1110_v31  ;;  %134 = vmatpush.msra.mxu0 %v81_v32 }
  0x31   :  { %135 = vmatmul.f32.vlgmr.msra.gmra.mxu0 %v1110_v31 }
  0x38   :  { %206 = vmatmul.f32.gmra.mxu1 %v1114_v33 }
  0x39   :  { %138 = vmatmul.f32.gmra.mxu0 %v1114_v33 }
  0x40   :  { %208 = vmatmul.f32.gmra.mxu1 %v1118_v34 }
  0x41   :  { %141 = vmatmul.f32.gmra.mxu0 %v1118_v34 }
  0x48   :  { %210 = vmatmul.f32.gmra.mxu1 %v1122_v35 }
  0x49   :  { %144 = vmatmul.f32.gmra.mxu0 %v1122_v35 }
  0x50   :  { %212 = vmatmul.f32.gmra.mxu1 %v1126_v36 }
  0x51   :  { %147 = vmatmul.f32.gmra.mxu0 %v1126_v36 }
  0x58   :  { %214 = vmatmul.f32.gmra.mxu1 %v1130_v37 }
  0x59   :  { %150 = vmatmul.f32.gmra.mxu0 %v1130_v37 }
  0x60   :  { %216 = vmatmul.f32.gmra.mxu1 %v1134_v38 }
  0x61   :  { %153 = vmatmul.f32.gmra.mxu0 %v1134_v38 }
  0x68   :  { %218 = vmatmul.f32.gmra.mxu1 %v1138_v39 }
  0x69   :  { %156 = vmatmul.f32.gmra.mxu0 %v1138_v39 }
  0x70   :  { %220 = vmatmul.f32.gmra.mxu1 %v71_v40 }
  0x71   :  { %159 = vmatmul.f32.gmra.mxu0 %v71_v40 }
  0x78   :  { %223 = vmatmul.f32.gmra.mxu1 %v1142_v41 }
  0x79   :  { %161 = vmatmul.f32.gmra.mxu0 %v1142_v41 }
  0x80   :  { %225 = vmatmul.f32.gmra.mxu1 %v1146_v42 }
  0x81   :  { %164 = vmatmul.f32.gmra.mxu0 %v1146_v42 }
  0x88   :  { %227 = vmatmul.f32.gmra.mxu1 %v1150_v43 }
  0x89   :  { %167 = vmatmul.f32.gmra.mxu0 %v1150_v43 }
  0x90   :  { %229 = vmatmul.f32.gmra.mxu1 %v1154_v44 }
  0x91   :  { %170 = vmatmul.f32.gmra.mxu0 %v1154_v44 }
  0x98   :  { %231 = vmatmul.f32.gmra.mxu1 %v1158_v45 }
  0x99   :  { %173 = vmatmul.f32.gmra.mxu0 %v1158_v45 }
  0xa0   :  { %233 = vmatmul.f32.gmra.mxu1 %v1162_v46 }
  0xa1   :  { %176 = vmatmul.f32.gmra.mxu0 %v1162_v46 }
  0xa8   :  { %235 = vmatmul.f32.gmra.mxu1 %v1166_v47 }
  0xa9   :  { %179 = vmatmul.f32.gmra.mxu0 %v1166_v47 }
  0xad   :  { %v205_v48 = vpop.f32.mrf.mxu1 }
  0xae   :  { %v136_v50 = vpop.f32.mrf.mxu0 }
  0xaf   :  { %v137_v9 = vadd.f32 %v136_v50, %v1178_v5 }
  0xb0   :  { %237 = vmatmul.f32.gmra.mxu1 %v1170_v49 }
  0xb1   :  { %182 = vmatmul.f32.gmra.mxu0 %v1170_v49 }
  0xb5   :  { %v207_v51 = vpop.f32.mrf.mxu1 }
  0xb6   :  { %v139_v53 = vpop.f32.mrf.mxu0 }
  0xb7   :  { %v140_v14 = vadd.f32 %v139_v53, %v1178_v5 }
  0xb8   :  { %239 = vmatmul.f32.gmra.mxu1 %v1174_v52 }
  0xb9   :  { %185 = vmatmul.f32.gmra.mxu0 %v1174_v52 }
  0xbd   :  { %v209_v54 = vpop.f32.mrf.mxu1 }
  0xbe   :  { %v142_v55 = vpop.f32.mrf.mxu0 }
  0xbf   :  { %v143_v19 = vadd.f32 %v142_v55, %v1178_v5 }
  0xc5   :  { %v211_v56 = vpop.f32.mrf.mxu1 }
  0xc6   :  { %v145_v57 = vpop.f32.mrf.mxu0 }
  0xc7   :  { %v146_v21 = vadd.f32 %v145_v57, %v1178_v5 }
  0xcd   :  { %v213_v58 = vpop.f32.mrf.mxu1 }
  0xce   :  { %v148_v59 = vpop.f32.mrf.mxu0 }
  0xcf   :  { %v149_v17 = vadd.f32 %v148_v59, %v1178_v5 }
  0xd5   :  { %v215_v60 = vpop.f32.mrf.mxu1 }
  0xd6   :  { %v151_v61 = vpop.f32.mrf.mxu0 }
  0xd7   :  { %v152_v16 = vadd.f32 %v151_v61, %v1178_v5 }
  0xdd   :  { %v217_v62 = vpop.f32.mrf.mxu1 }
  0xde   :  { %v154_v63 = vpop.f32.mrf.mxu0 }
  0xdf   :  { %v155_v12 = vadd.f32 %v154_v63, %v1178_v5 }
  0xe5   :  { %v219_v0 = vpop.f32.mrf.mxu1 }
  0xe6   :  { %v157_v2 = vpop.f32.mrf.mxu0 }
  0xe7   :  { %v158_v11 = vadd.f32 %v157_v2, %v1178_v5 }
  0xed   :  { %v221_v7 = vpop.f32.mrf.mxu1 }
  0xee   :  { %v1182_v8 = vadd.f32 %v221_v7, %v116_v4  ;;  %v160_v10 = vpop.f32.mrf.mxu0 }
  0xf0   :  { %280 = vmatpush.xpose.msra.mxu2 %v1182_v8 }
  0xf3   :  { %819 = vmatmul.msk.f32.vlgmr.msra.gmra.mxu2 %vm245_vm0, %v137_v9 }
  0xf4   :  { %563 = vmatpush.msrb.mxu2 %v71_v40 }
  0xf5   :  { %v224_v13 = vpop.f32.mrf.mxu1 }
  0xf6   :  { %678 = vmatpush.xpose.msra.mxu2 %v158_v11  ;;  %v162_v15 = vpop.f32.mrf.mxu0 }
  0xf7   :  { %v163_v53 = vadd.f32 %v162_v15, %v1178_v5 }
  0xfa   :  { %679 = vmatpush.xpose.msra.mxu2 %v155_v12 }
  0xfb   :  { %820 = vmatmul.msk.f32.gmra.mxu2 %vm245_vm0, %v140_v14 }
  0xfd   :  { %v226_v18 = vpop.f32.mrf.mxu1 }
  0xfe   :  { %680 = vmatpush.xpose.msra.mxu2 %v152_v16  ;;  %v165_v20 = vpop.f32.mrf.mxu0 }
  0xff   :  { %v166_v57 = vadd.f32 %v165_v20, %v1178_v5 }
 0x102   :  { %681 = vmatpush.xpose.msra.mxu2 %v149_v17 }
 0x103   :  { %821 = vmatmul.msk.f32.gmra.mxu2 %vm245_vm0, %v143_v19 }
 0x105   :  { %v228_v22 = vpop.f32.mrf.mxu1 }
 0x106   :  { %682 = vmatpush.xpose.msra.mxu2 %v146_v21  ;;  %v168_v23 = vpop.f32.mrf.mxu0 }
 0x107   :  { %v169_v60 = vadd.f32 %v168_v23, %v1178_v5 }
 0x10a   :  { %683 = vmatpush.xpose.msra.mxu2 %v143_v19 }
 0x10b   :  { %822 = vmatmul.msk.f32.gmra.mxu2 %vm245_vm0, %v146_v21 }
 0x10d   :  { %v230_v24 = vpop.f32.mrf.mxu1 }
 0x10e   :  { %684 = vmatpush.xpose.msra.mxu2 %v140_v14  ;;  %v171_v25 = vpop.f32.mrf.mxu0 }
 0x112   :  { %685 = vmatpush.xpose.msra.mxu2 %v137_v9 }
 0x113   :  { %823 = vmatmul.msk.f32.gmra.mxu2 %vm245_vm0, %v149_v17 }
 0x115   :  { %v232_v26 = vpop.f32.mrf.mxu1 }
 0x116   :  { %v174_v27 = vpop.f32.mrf.mxu0 }
 0x117   :  { %v175_v59 = vadd.f32 %v174_v27, %v1178_v5 }
 0x11b   :  { %824 = vmatmul.msk.f32.gmra.mxu2 %vm245_vm0, %v152_v16 }
 0x11d   :  { %v234_v28 = vpop.f32.mrf.mxu1 }
 0x11e   :  { %v177_v29 = vpop.f32.mrf.mxu0 }
 0x11f   :  { %v178_v58 = vadd.f32 %v177_v29, %v1178_v5 }
 0x123   :  { %825 = vmatmul.msk.f32.gmra.mxu2 %vm245_vm0, %v155_v12 }
 0x125   :  { %v236_v30 = vpop.f32.mrf.mxu1 }
 0x126   :  { %v180_v32 = vpop.f32.mrf.mxu0 }
 0x127   :  { %v181_v56 = vadd.f32 %v180_v32, %v1178_v5 }
 0x12b   :  { %826 = vmatmul.msk.f32.gmra.mxu2 %vm245_vm0, %v158_v11 }
 0x12d   :  { %v238_v40 = vpop.f32.mrf.mxu1 }
 0x12e   :  { %v183_v48 = vpop.f32.mrf.mxu0 }
 0x12f   :  { %v184_v55 = vadd.f32 %v183_v48, %v1178_v5 }
 0x135   :  { %v240_v50 = vpop.f32.mrf.mxu1 }
 0x136   :  { %v1210_v51 = vadd.f32 %v240_v50, %v116_v4  ;;  %v186_v54 = vpop.f32.mrf.mxu0 }
 0x138   :  { %321 = vmatpush.xpose.msra.mxu3 %v1210_v51 }
 0x13b   :  { %827 = vmatmul.msk.f32.vlgmr.msra.gmra.mxu3 %vm245_vm0, %v163_v53 }
 0x13c   :  { %628 = vmatpush.msrb.mxu3 %v1174_v52  ;;  %v172_v52 = vadd.f32 %v171_v25, %v1178_v5 }
 0x13e   :  { %698 = vmatpush.xpose.msra.mxu3 %v184_v55 }
 0x142   :  { %699 = vmatpush.xpose.msra.mxu3 %v181_v56 }
 0x143   :  { %828 = vmatmul.msk.f32.gmra.mxu3 %vm245_vm0, %v166_v57 }
 0x146   :  { %700 = vmatpush.xpose.msra.mxu3 %v178_v58 }
 0x14a   :  { %701 = vmatpush.xpose.msra.mxu3 %v175_v59 }
 0x14b   :  { %829 = vmatmul.msk.f32.gmra.mxu3 %vm245_vm0, %v169_v60 }
 0x14e   :  { %702 = vmatpush.xpose.msra.mxu3 %v172_v52 }
 0x152   :  { %703 = vmatpush.xpose.msra.mxu3 %v169_v60 }
 0x153   :  { %830 = vmatmul.msk.f32.gmra.mxu3 %vm245_vm0, %v172_v52 }
 0x156   :  { %704 = vmatpush.xpose.msra.mxu3 %v166_v57 }
 0x15a   :  { %705 = vmatpush.xpose.msra.mxu3 %v163_v53 }
 0x15b   :  { %831 = vmatmul.msk.f32.gmra.mxu3 %vm245_vm0, %v175_v59 }
 0x163   :  { %832 = vmatmul.msk.f32.gmra.mxu3 %vm245_vm0, %v178_v58 }
 0x16b   :  { %833 = vmatmul.msk.f32.gmra.mxu3 %vm245_vm0, %v181_v56 }
 0x173   :  { %834 = vmatmul.msk.f32.gmra.mxu3 %vm245_vm0, %v184_v55 }
 0x176   :  { %v282_v61 = vpop.f32.mrf.mxu2 }
 0x177   :  { %v348_v62 = vsel %vm347_vm1, %v282_v61, -inf }
 0x178   :  { %349 = vmax.xlane.f32.xlu0 %v348_v62 }
 0x17e   :  { %v1239_v63 = vpop.f32.mrf.mxu2 }
 0x17f   :  { %v351_v0 = vsel %vm347_vm1, %v1239_v63, -inf }
 0x180   :  { %352 = vmax.xlane.f32.xlu1 %v351_v0 }
 0x186   :  { %v288_v1 = vpop.f32.mrf.mxu2 }
 0x187   :  { %v354_v2 = vsel %vm347_vm1, %v288_v1, -inf }
 0x188   :  { %355 = vmax.xlane.f32.xlu2 %v354_v2 }
 0x18e   :  { %v1245_v5 = vpop.f32.mrf.mxu2 }
 0x18f   :  { %v357_v10 = vsel %vm347_vm1, %v1245_v5, -inf }
 0x196   :  { %v1254_v13 = vpop.f32.mrf.mxu2 }
 0x197   :  { %v360_v16 = vsel %vm347_vm1, %v1254_v13, -inf }
 0x19e   :  { %v1262_v17 = vpop.f32.mrf.mxu2 }
 0x19f   :  { %v363_v20 = vsel %vm347_vm1, %v1262_v17, -inf }
 0x1a6   :  { %v1270_v21 = vpop.f32.mrf.mxu2 }
 0x1a7   :  { %v366_v24 = vsel %vm347_vm1, %v1270_v21, -inf }
 0x1ae   :  { %v1282_v30 = vpop.f32.mrf.mxu2 }
 0x1af   :  { %v369_v48 = vsel %vm347_vm1, %v1282_v30, -inf }
 0x1be   :  { %v323_v3 = vpop.f32.mrf.mxu3 }
 0x1bf   :  { %v372_v4 = vsel %vm347_vm1, %v323_v3, -inf }
 0x1c0   :  { %373 = vmax.xlane.f32.xlu0 %v372_v4 }
 0x1c6   :  { %v326_v7 = vpop.f32.mrf.mxu3 }
 0x1c7   :  { %v375_v9 = vsel %vm347_vm1, %v326_v7, -inf }
 0x1c8   :  { %376 = vmax.xlane.f32.xlu1 %v375_v9  ;;  %358 = vmax.xlane.f32.xlu0 %v357_v10 }
 0x1ce   :  { %v1250_v11 = vpop.f32.mrf.mxu3 }
 0x1cf   :  { %v378_v12 = vsel %vm347_vm1, %v1250_v11, -inf }
 0x1d0   :  { %379 = vmax.xlane.f32.xlu2 %v378_v12 }
 0x1d6   :  { %v1256_v14 = vpop.f32.mrf.mxu3 }
 0x1d7   :  { %v381_v15 = vsel %vm347_vm1, %v1256_v14, -inf }
 0x1d8   :  { %382 = vmax.xlane.f32.xlu1 %v381_v15  ;;  %361 = vmax.xlane.f32.xlu2 %v360_v16 }
 0x1de   :  { %v1264_v18 = vpop.f32.mrf.mxu3 }
 0x1df   :  { %v384_v19 = vsel %vm347_vm1, %v1264_v18, -inf }
 0x1e0   :  { %385 = vmax.xlane.f32.xlu0 %v384_v19  ;;  %364 = vmax.xlane.f32.xlu1 %v363_v20 }
 0x1e6   :  { %v1272_v22 = vpop.f32.mrf.mxu3 }
 0x1e7   :  { %v387_v23 = vsel %vm347_vm1, %v1272_v22, -inf }
 0x1e8   :  { %388 = vmax.xlane.f32.xlu2 %v387_v23  ;;  %367 = vmax.xlane.f32.xlu0 %v366_v24 }
 0x1eb   :  { %v350_v25 = vpop.xlane.xlu0 %349 }
 0x1ec   :  { %v396_v26 = vsub.f32 %v282_v61, %v350_v25 }
 0x1ee   :  { %v412_v27 = vmul.f32 1.442695, %v396_v26  ;;  %v1278_v28 = vpop.f32.mrf.mxu3 }
 0x1ef   :  { %v390_v29 = vsel %vm347_vm1, %v1278_v28, -inf }
 0x1f0   :  { %864 = vpow2.f32 %v412_v27  ;;  %391 = vmax.xlane.f32.xlu1 %v390_v29 }
 0x1f3   :  { %v353_v59 = vpop.xlane.xlu1 %352 }
 0x1f4   :  { %v397_v61 = vsub.f32 %v1239_v63, %v353_v59 }
 0x1f6   :  { %v1284_v32 = vpop.eup %864  ;;  %v1290_v50 = vpop.f32.mrf.mxu3  ;;  %v414_v0 = vmul.f32 1.442695, %v397_v61 }
 0x1f7   :  { %v444_v40 = vsel %vm347_vm1, %v1284_v32, 0.0  ;;  %v393_v55 = vsel %vm347_vm1, %v1290_v50, -inf }
 0x1f8   :  { %445 = vadd.xlane.f32.xlu2 %v444_v40  ;;  %370 = vmax.xlane.f32.xlu1 %v369_v48 }
 0x1fb   :  { %v356_v53 = vpop.xlane.xlu2 %355 }
 0x1fc   :  { %v398_v54 = vsub.f32 %v288_v1, %v356_v53 }
 0x1fe   :  { %v416_v56 = vmul.f32 1.442695, %v398_v54 }
 0x200   :  { %866 = vpow2.f32 %v416_v56  ;;  %394 = vmax.xlane.f32.xlu2 %v393_v55 }
 0x206   :  { %v1294_v57 = vpop.eup %866 }
 0x207   :  { %v450_v58 = vsel %vm347_vm1, %v1294_v57, 0.0 }
 0x208   :  { %451 = vadd.xlane.f32.xlu2 %v450_v58 }
 0x233   :  { %v374_v60 = vpop.xlane.xlu0 %373 }
 0x234   :  { %v404_v52 = vsub.f32 %v323_v3, %v374_v60 }
 0x236   :  { %v428_v62 = vmul.f32 1.442695, %v404_v52 }
 0x238   :  { %868 = vpow2.f32 %v428_v62 }
 0x239   :  { %870 = vpow2.f32 %v414_v0 }
 0x23b   :  { %v377_v1 = vpop.xlane.xlu1 %376  ;;  %v359_v2 = vpop.xlane.xlu0 %358 }
 0x23c   :  { %v405_v4 = vsub.f32 %v326_v7, %v377_v1  ;;  %v399_v12 = vsub.f32 %v1245_v5, %v359_v2 }
 0x23e   :  { %v1299_v9 = vpop.eup %868  ;;  %v430_v10 = vmul.f32 1.442695, %v405_v4  ;;  %v418_v3 = vmul.f32 1.442695, %v399_v12 }
 0x23f   :  { %v468_v15 = vsel %vm347_vm1, %v1299_v9, 0.0  ;;  %v1304_v63 = vpop.eup %870 }
 0x240   :  { %872 = vpow2.f32 %v430_v10  ;;  %469 = vadd.xlane.f32.xlu0 %v468_v15  ;;  %v447_v23 = vsel %vm347_vm1, %v1304_v63, 0.0 }
 0x241   :  { %874 = vpow2.f32 %v418_v3 }
 0x243   :  { %v380_v16 = vpop.xlane.xlu2 %379 }
 0x244   :  { %v406_v19 = vsub.f32 %v1250_v11, %v380_v16 }
 0x246   :  { %v1307_v20 = vpop.eup %872  ;;  %v432_v7 = vmul.f32 1.442695, %v406_v19 }
 0x247   :  { %v471_v5 = vsel %vm347_vm1, %v1307_v20, 0.0  ;;  %v1313_v26 = vpop.eup %874 }
 0x248   :  { %876 = vpow2.f32 %v432_v7  ;;  %448 = vadd.xlane.f32.xlu0 %v447_v23  ;;  %472 = vadd.xlane.f32.xlu1 %v471_v5  ;;  %v453_v54 = vsel %vm347_vm1, %v1313_v26, 0.0 }
 0x24b   :  { %v383_v24 = vpop.xlane.xlu1 %382  ;;  %v362_v25 = vpop.xlane.xlu2 %361 }
 0x24c   :  { %v407_v27 = vsub.f32 %v1256_v14, %v383_v24  ;;  %v400_v11 = vsub.f32 %v1254_v13, %v362_v25 }
 0x24e   :  { %v1317_v29 = vpop.eup %876  ;;  %v434_v40 = vmul.f32 1.442695, %v407_v27  ;;  %v420_v48 = vmul.f32 1.442695, %v400_v11 }
 0x24f   :  { %v474_v53 = vsel %vm347_vm1, %v1317_v29, 0.0 }
 0x250   :  { %878 = vpow2.f32 %v434_v40  ;;  %475 = vadd.xlane.f32.xlu0 %v474_v53  ;;  %454 = vadd.xlane.f32.xlu1 %v453_v54 }
 0x251   :  { %880 = vpow2.f32 %v420_v48 }
 0x253   :  { %v386_v55 = vpop.xlane.xlu0 %385  ;;  %v365_v56 = vpop.xlane.xlu1 %364 }
 0x254   :  { %v408_v14 = vsub.f32 %v1264_v18, %v386_v55  ;;  %v401_v13 = vsub.f32 %v1262_v17, %v365_v56 }
 0x256   :  { %v1325_v58 = vpop.eup %878  ;;  %v436_v59 = vmul.f32 1.442695, %v408_v14  ;;  %v422_v60 = vmul.f32 1.442695, %v401_v13 }
 0x257   :  { %v1327_v52 = vpop.eup %880  ;;  %v477_v61 = vsel %vm347_vm1, %v1325_v58, 0.0 }
 0x258   :  { %882 = vpow2.f32 %v436_v59  ;;  %478 = vadd.xlane.f32.xlu2 %v477_v61  ;;  %v456_v62 = vsel %vm347_vm1, %v1327_v52, 0.0 }
 0x259   :  { %884 = vpow2.f32 %v422_v60  ;;  %457 = vadd.xlane.f32.xlu0 %v456_v62 }
 0x25b   :  { %v389_v0 = vpop.xlane.xlu2 %388  ;;  %v368_v18 = vpop.xlane.xlu0 %367 }
 0x25c   :  { %v409_v17 = vsub.f32 %v1272_v22, %v389_v0  ;;  %v402_v1 = vsub.f32 %v1270_v21, %v368_v18 }
 0x25e   :  { %v1335_v2 = vpop.eup %882  ;;  %v438_v4 = vmul.f32 1.442695, %v409_v17  ;;  %v424_v10 = vmul.f32 1.442695, %v402_v1 }
 0x25f   :  { %v1337_v12 = vpop.eup %884  ;;  %v480_v15 = vsel %vm347_vm1, %v1335_v2, 0.0 }
 0x260   :  { %886 = vpow2.f32 %v438_v4  ;;  %v459_v3 = vsel %vm347_vm1, %v1337_v12, 0.0  ;;  %481 = vadd.xlane.f32.xlu1 %v480_v15 }
 0x261   :  { %888 = vpow2.f32 %v424_v10  ;;  %460 = vadd.xlane.f32.xlu2 %v459_v3 }
 0x263   :  { %v392_v16 = vpop.xlane.xlu1 %391 }
 0x264   :  { %v410_v22 = vsub.f32 %v1278_v28, %v392_v16 }
 0x266   :  { %v1344_v21 = vpop.eup %886  ;;  %v440_v19 = vmul.f32 1.442695, %v410_v22 }
 0x267   :  { %v1346_v7 = vpop.eup %888  ;;  %v483_v23 = vsel %vm347_vm1, %v1344_v21, 0.0 }
 0x268   :  { %890 = vpow2.f32 %v440_v19  ;;  %484 = vadd.xlane.f32.xlu0 %v483_v23  ;;  %v462_v5 = vsel %vm347_vm1, %v1346_v7, 0.0 }
 0x269   :  { %463 = vadd.xlane.f32.xlu1 %v462_v5 }
 0x26b   :  { %v446_v24 = vpop.xlane.xlu2 %445  ;;  %v371_v25 = vpop.xlane.xlu1 %370 }
 0x26c   :  { %892 = vrcp.f32 %v446_v24  ;;  %v403_v27 = vsub.f32 %v1282_v30, %v371_v25 }
 0x26e   :  { %v1353_v28 = vpop.eup %890  ;;  %v426_v11 = vmul.f32 1.442695, %v403_v27 }
 0x26f   :  { %v486_v40 = vsel %vm347_vm1, %v1353_v28, 0.0 }
 0x270   :  { %894 = vpow2.f32 %v426_v11  ;;  %487 = vadd.xlane.f32.xlu2 %v486_v40 }
 0x272   :  { %v893_v48 = vpop.eup %892 }
 0x273   :  { %v395_v53 = vpop.xlane.xlu2 %394  ;;  %v508_v54 = vmul.f32 %v893_v48, %v1284_v32 }
 0x274   :  { %v411_v55 = vsub.f32 %v1290_v50, %v395_v53 }
 0x275   :  { %835 = vmatmul.msk.f32.vlgmr.msrb.gmra.mxu2 %vm347_vm1, %v508_v54 }
 0x276   :  { %v1360_v56 = vpop.eup %894  ;;  %v442_v14 = vmul.f32 1.442695, %v411_v55  ;;  %744 = vmatpush.msrb.mxu2 %v1138_v39 }
 0x277   :  { %v465_v30 = vsel %vm347_vm1, %v1360_v56, 0.0 }
 0x278   :  { %896 = vpow2.f32 %v442_v14  ;;  %466 = vadd.xlane.f32.xlu0 %v465_v30  ;;  %745 = vmatpush.msrb.mxu2 %v1134_v38 }
 0x27a   :  { %746 = vmatpush.msrb.mxu2 %v1130_v37 }
 0x27c   :  { %747 = vmatpush.msrb.mxu2 %v1126_v36 }
 0x27e   :  { %v1368_v32 = vpop.eup %896  ;;  %748 = vmatpush.msrb.mxu2 %v1122_v35  ;;  %v452_v35 = vpop.xlane.xlu2 %451 }
 0x27f   :  { %v489_v50 = vsel %vm347_vm1, %v1368_v32, 0.0 }
 0x280   :  { %490 = vadd.xlane.f32.xlu1 %v489_v50  ;;  %749 = vmatpush.msrb.mxu2 %v1118_v34 }
 0x282   :  { %750 = vmatpush.msrb.mxu2 %v1114_v33 }
 0x284   :  { %751 = vmatpush.msrb.mxu2 %v1110_v31 }
 0x2b3   :  { %v470_v39 = vpop.xlane.xlu0 %469 }
 0x2b4   :  { %898 = vrcp.f32 %v470_v39 }
 0x2ba   :  { %v899_v38 = vpop.eup %898 }
 0x2bb   :  { %v449_v37 = vpop.xlane.xlu0 %448  ;;  %v473_v13 = vpop.xlane.xlu1 %472  ;;  %v516_v36 = vmul.f32 %v899_v38, %v1299_v9 }
 0x2bc   :  { %900 = vrcp.f32 %v449_v37 }
 0x2bd   :  { %902 = vrcp.f32 %v473_v13  ;;  %843 = vmatmul.msk.f32.vlgmr.msrb.gmra.mxu3 %vm347_vm1, %v516_v36 }
 0x2be   :  { %767 = vmatpush.msrb.mxu3 %v1170_v49  ;;  %904 = vrcp.f32 %v452_v35 }
 0x2c0   :  { %768 = vmatpush.msrb.mxu3 %v1166_v47 }
 0x2c2   :  { %v901_v34 = vpop.eup %900  ;;  %769 = vmatpush.msrb.mxu3 %v1162_v46 }
 0x2c3   :  { %v903_v31 = vpop.eup %902  ;;  %v476_v33 = vpop.xlane.xlu0 %475  ;;  %v509_v59 = vmul.f32 %v901_v34, %v1304_v63 }
 0x2c4   :  { %906 = vrcp.f32 %v476_v33  ;;  %v517_v9 = vmul.f32 %v903_v31, %v1307_v20  ;;  %770 = vmatpush.msrb.mxu3 %v1158_v45  ;;  %v455_v49 = vpop.xlane.xlu1 %454  ;;  %v905_v47 = vpop.eup %904 }
 0x2c5   :  { %836 = vmatmul.msk.f32.gmra.mxu2 %vm347_vm1, %v509_v59  ;;  %908 = vrcp.f32 %v455_v49  ;;  %v510_v63 = vmul.f32 %v905_v47, %v1294_v57 }
 0x2c6   :  { %844 = vmatmul.msk.f32.gmra.mxu3 %vm347_vm1, %v517_v9 }
 0x2c7   :  { %771 = vmatpush.msrb.mxu3 %v1154_v44 }
 0x2c9   :  { %772 = vmatpush.msrb.mxu3 %v1150_v43 }
 0x2ca   :  { %v907_v46 = vpop.eup %906 }
 0x2cb   :  { %v479_v60 = vpop.xlane.xlu2 %478  ;;  %v518_v61 = vmul.f32 %v907_v46, %v1317_v29  ;;  %773 = vmatpush.msrb.mxu3 %v1146_v42  ;;  %v909_v45 = vpop.eup %908 }
 0x2cc   :  { %910 = vrcp.f32 %v479_v60  ;;  %v458_v44 = vpop.xlane.xlu0 %457  ;;  %v511_v62 = vmul.f32 %v909_v45, %v1313_v26 }
 0x2cd   :  { %837 = vmatmul.msk.f32.gmra.mxu2 %vm347_vm1, %v510_v63  ;;  %774 = vmatpush.msrb.mxu3 %v1142_v41  ;;  %912 = vrcp.f32 %v458_v44 }
 0x2ce   :  { %845 = vmatmul.msk.f32.gmra.mxu3 %vm347_vm1, %v518_v61 }
 0x2d2   :  { %v911_v20 = vpop.eup %910 }
 0x2d3   :  { %v482_v43 = vpop.xlane.xlu1 %481  ;;  %v519_v57 = vmul.f32 %v911_v20, %v1325_v58  ;;  %v913_v29 = vpop.eup %912 }
 0x2d4   :  { %914 = vrcp.f32 %v482_v43  ;;  %v461_v42 = vpop.xlane.xlu2 %460  ;;  %v512_v18 = vmul.f32 %v913_v29, %v1327_v52 }
 0x2d5   :  { %838 = vmatmul.msk.f32.gmra.mxu2 %vm347_vm1, %v511_v62  ;;  %916 = vrcp.f32 %v461_v42 }
 0x2d6   :  { %846 = vmatmul.msk.f32.gmra.mxu3 %vm347_vm1, %v519_v57 }
 0x2da   :  { %v915_v0 = vpop.eup %914 }
 0x2db   :  { %v485_v41 = vpop.xlane.xlu0 %484  ;;  %v520_v17 = vmul.f32 %v915_v0, %v1335_v2  ;;  %v917_v58 = vpop.eup %916 }
 0x2dc   :  { %918 = vrcp.f32 %v485_v41  ;;  %v464_v26 = vpop.xlane.xlu1 %463  ;;  %v513_v10 = vmul.f32 %v917_v58, %v1337_v12 }
 0x2dd   :  { %839 = vmatmul.msk.f32.gmra.mxu2 %vm347_vm1, %v512_v18  ;;  %920 = vrcp.f32 %v464_v26 }
 0x2de   :  { %847 = vmatmul.msk.f32.gmra.mxu3 %vm347_vm1, %v520_v17 }
 0x2e2   :  { %v919_v1 = vpop.eup %918 }
 0x2e3   :  { %v488_v4 = vpop.xlane.xlu2 %487  ;;  %v521_v15 = vmul.f32 %v919_v1, %v1344_v21  ;;  %v921_v52 = vpop.eup %920 }
 0x2e4   :  { %922 = vrcp.f32 %v488_v4  ;;  %v514_v16 = vmul.f32 %v921_v52, %v1346_v7 }
 0x2e5   :  { %840 = vmatmul.msk.f32.gmra.mxu2 %vm347_vm1, %v513_v10 }
 0x2e6   :  { %848 = vmatmul.msk.f32.gmra.mxu3 %vm347_vm1, %v521_v15 }
 0x2ea   :  { %v923_v2 = vpop.eup %922 }
 0x2eb   :  { %v467_v3 = vpop.xlane.xlu0 %466  ;;  %v522_v22 = vmul.f32 %v923_v2, %v1353_v28 }
 0x2ec   :  { %924 = vrcp.f32 %v467_v3 }
 0x2ed   :  { %841 = vmatmul.msk.f32.gmra.mxu2 %vm347_vm1, %v514_v16 }
 0x2ee   :  { %849 = vmatmul.msk.f32.gmra.mxu3 %vm347_vm1, %v522_v22 }
 0x2f2   :  { %v925_v12 = vpop.eup %924 }
 0x2f3   :  { %v491_v19 = vpop.xlane.xlu1 %490  ;;  %v515_v21 = vmul.f32 %v925_v12, %v1360_v56 }
 0x2f4   :  { %926 = vrcp.f32 %v491_v19 }
 0x2f5   :  { %842 = vmatmul.msk.f32.gmra.mxu2 %vm347_vm1, %v515_v21 }
 0x2f8   :  { %v565_v23 = vpop.f32.mrf.mxu2 }
 0x2f9   :  { %654 = vst [vmem:[#allocation8] sm:$0xff] %v565_v23 }
 0x2fa   :  { %v927_v5 = vpop.eup %926 }
 0x2fb   :  { %v523_v7 = vmul.f32 %v927_v5, %v1368_v32 }
 0x2fd   :  { %850 = vmatmul.msk.f32.gmra.mxu3 %vm347_vm1, %v523_v7  ;;  %851 = vmatmul.msk.f32.vlgmr.msra.gmra.mxu2 %vm262_vm2, %v1182_v8 }
 0x305   :  { %852 = vmatmul.msk.f32.vlgmr.msra.gmra.mxu3 %vm262_vm2, %v1210_v51 }
 0x340   :  { %v630_v24 = vpop.f32.mrf.mxu3 }
 0x341   :  { %662 = vst [vmem:[#allocation8 + $0x40] sm:$0xff] %v630_v24 }
 0x348   :  { %v568_v25 = vpop.f32.mrf.mxu2 }
 0x349   :  { %655 = vst [vmem:[#allocation8 + $0x8] sm:$0xff] %v568_v25  ;;  %v633_v27 = vpop.f32.mrf.mxu3 }
 0x34a   :  { %663 = vst [vmem:[#allocation8 + $0x48] sm:$0xff] %v633_v27 }
 0x350   :  { %v571_v28 = vpop.f32.mrf.mxu2 }
 0x351   :  { %656 = vst [vmem:[#allocation8 + $0x10] sm:$0xff] %v571_v28  ;;  %v636_v11 = vpop.f32.mrf.mxu3 }
 0x352   :  { %664 = vst [vmem:[#allocation8 + $0x50] sm:$0xff] %v636_v11 }
 0x358   :  { %v574_v40 = vpop.f32.mrf.mxu2 }
 0x359   :  { %657 = vst [vmem:[#allocation8 + $0x18] sm:$0xff] %v574_v40  ;;  %v639_v6 = vpop.f32.mrf.mxu3 }
 0x35a   :  { %665 = vst [vmem:[#allocation8 + $0x58] sm:$0xff] %v639_v6 }
 0x360   :  { %v577_v48 = vpop.f32.mrf.mxu2 }
 0x361   :  { %658 = vst [vmem:[#allocation8 + $0x20] sm:$0xff] %v577_v48  ;;  %v642_v53 = vpop.f32.mrf.mxu3 }
 0x362   :  { %666 = vst [vmem:[#allocation8 + $0x60] sm:$0xff] %v642_v53 }
 0x368   :  { %v580_v8 = vpop.f32.mrf.mxu2 }
 0x369   :  { %659 = vst [vmem:[#allocation8 + $0x28] sm:$0xff] %v580_v8  ;;  %v645_v51 = vpop.f32.mrf.mxu3 }
 0x36a   :  { %667 = vst [vmem:[#allocation8 + $0x68] sm:$0xff] %v645_v51 }
 0x370   :  { %v583_v54 = vpop.f32.mrf.mxu2 }
 0x371   :  { %660 = vst [vmem:[#allocation8 + $0x30] sm:$0xff] %v583_v54  ;;  %v648_v55 = vpop.f32.mrf.mxu3 }
 0x372   :  { %668 = vst [vmem:[#allocation8 + $0x70] sm:$0xff] %v648_v55 }
 0x378   :  { %v586_v56 = vpop.f32.mrf.mxu2 }
 0x379   :  { %661 = vst [vmem:[#allocation8 + $0x38] sm:$0xff] %v586_v56 }
 0x380   :  { %v651_v14 = vpop.f32.mrf.mxu3  ;;  %v687_v30 = vpop.f32.mrf.mxu2 }
 0x381   :  { %669 = vst [vmem:[#allocation8 + $0x78] sm:$0xff] %v651_v14  ;;  %v711_v32 = vsel %vm710_vm3, %v687_v30, -inf }
 0x382   :  { %712 = vmax.xlane.f32.xlu2 %v711_v32  ;;  %793 = dma.vmem_to_hbm [thread:$0]  %s786_s6, 2048, %s788_s9, [#allocation4], %s1068_s27, %s1068_s27, %s1069_s28  }
 0x388   :  { %v707_v50 = vpop.f32.mrf.mxu3 }
 0x389   :  { %v714_v39 = vsel %vm710_vm3, %v707_v50, -inf }
 0x38a   :  { %715 = vmax.xlane.f32.xlu0 %v714_v39 }
 0x3f5   :  { %v713_v38 = vpop.xlane.xlu2 %712 }
 0x3f6   :  { %v717_v37 = vsub.f32 %v687_v30, %v713_v38 }
 0x3f8   :  { %v719_v13 = vmul.f32 1.442695, %v717_v37 }
 0x3fa   :  { %928 = vpow2.f32 %v719_v13 }
 0x3fd   :  { %v716_v36 = vpop.xlane.xlu0 %715 }
 0x3fe   :  { %v718_v35 = vsub.f32 %v707_v50, %v716_v36 }
 0x400   :  { %v929_v34 = vpop.eup %928  ;;  %v721_v31 = vmul.f32 1.442695, %v718_v35 }
 0x401   :  { %v723_v33 = vsel %vm710_vm3, %v929_v34, 0.0 }
 0x402   :  { %930 = vpow2.f32 %v721_v31  ;;  %724 = vadd.xlane.f32.xlu1 %v723_v33 }
 0x408   :  { %v931_v59 = vpop.eup %930 }
 0x409   :  { %v726_v9 = vsel %vm710_vm3, %v931_v59, 0.0 }
 0x40a   :  { %727 = vadd.xlane.f32.xlu2 %v726_v9 }
 0x475   :  { %v725_v49 = vpop.xlane.xlu1 %724 }
 0x476   :  { %932 = vrcp.f32 %v725_v49 }
 0x47c   :  { %v933_v47 = vpop.eup %932 }
 0x47d   :  { %v731_v46 = vmul.f32 %v933_v47, %v929_v34  ;;  %v728_v60 = vpop.xlane.xlu2 %727 }
 0x47e   :  { %934 = vrcp.f32 %v728_v60 }
 0x47f   :  { %853 = vmatmul.msk.f32.vlgmr.msrb.gmra.mxu2 %vm710_vm3, %v731_v46 }
 0x484   :  { %v935_v63 = vpop.eup %934 }
 0x485   :  { %v732_v61 = vmul.f32 %v935_v63, %v931_v59 }
 0x487   :  { %854 = vmatmul.msk.f32.vlgmr.msrb.gmra.mxu3 %vm710_vm3, %v732_v61 }
 0x502   :  { %v753_v44 = vpop.f32.mrf.mxu2 }
 0x503   :  { %779 = vst [vmem:[#allocation9] sm:$0xff] %v753_v44 }
 0x50a   :  { %v776_v45 = vpop.f32.mrf.mxu3 }
 0x50b   :  { %780 = vst [vmem:[#allocation9 + $0x8] sm:$0xff] %v776_v45 }
 0x50c   :  { %806 = dma.vmem_to_hbm [thread:$0]  %s799_s11, 256, %s801_s14, [#allocation10], %s1068_s27, %s1068_s27, %s1069_s28  }
 0x50d   :  { %1060 = dma.done.wait [#allocation4], 2048  }
 0x50e   :  { %1061 = vsyncadd [#allocation4], 4294965248 }
 0x50f   :  { %1062 = dma.done.wait [#allocation10], 256  }
 0x510   :  { %1063 = vsyncadd [#allocation10], 4294967040 }
 0x511   :  { %815 = vsyncpa [#allocation3], 1 }
 0x512   :  { %816 = vsyncpa [#allocation6], 1 }
 0x513   :  { %817 = vsyncpa [#allocation4], 1 }
 0x514   :  { %818 = vsyncpa [#allocation10], 1 }

</bundles_post_ra>
